<compile_context>
chip_gen: v7x
topology: tpu7x:2x2x1
jax: 0.10.0
libtpu: 0.0.40
codegen_flags: <defaults>
</compile_context>

<pallas_src>
import functools

import numpy as np
import jax
import jax.numpy as jnp
from jax import lax
from jax.experimental import pallas as pl
from jax.experimental.pallas import tpu as pltpu


# ----------------------------------------------------------------------------
# DFT bases
# ----------------------------------------------------------------------------
def _dft_basis(n):
    """Real cosine/sine DFT basis matrices of size (n, n), float32, symmetric."""
    idx = np.arange(n, dtype=np.int64)
    # Reduce k*m mod n before scaling so the angles stay small and exact.
    ang = (2.0 * np.pi / n) * np.mod(idx[:, None] * idx[None, :], n)
    return (jnp.asarray(np.cos(ang), dtype=jnp.float32),
            jnp.asarray(np.sin(ang), dtype=jnp.float32))


# ----------------------------------------------------------------------------
# MXU helpers: f32 matmul as 1 or 3 single-pass bf16 matmuls
# ----------------------------------------------------------------------------
def _bf16_split(a_f32, compensated):
    """Split an f32 array into (hi, lo) bf16 parts.  lo is None when not
    compensating (plain 1-pass bf16)."""
    hi = a_f32.astype(jnp.bfloat16)
    if not compensated:
        return hi, None
    lo = (a_f32 - hi.astype(jnp.float32)).astype(jnp.bfloat16)
    return hi, lo


def _split_dot(a, b):
    """(hi,lo) x (hi,lo) -> f32.  Drops the lo*lo term (classic bf16_3x):
    3 native single-pass bf16 MXU matmuls instead of Precision.HIGHEST's 6."""
    a_hi, a_lo = a
    b_hi, b_lo = b
    d = lambda p, q: jnp.dot(p, q, preferred_element_type=jnp.float32)
    out = d(a_hi, b_hi)
    if a_lo is not None:
        out = out + (d(a_hi, b_lo) + d(a_lo, b_hi))
    return out


# ----------------------------------------------------------------------------
# Kernel
# ----------------------------------------------------------------------------
def _fft2_real_body(x_ref, cn_ref, sn_ref, cm_ref, sm_ref, o_ref,
                    yre_ref, yim_ref, *, bm, compensated):
    """Shared kernel body.

    x_ref / o_ref : (tb*M, N) flattened batch-of-rows tile (lane-dense).
    cn/sn         : (N, N) f32 bases for the last-axis DFT (VMEM resident).
    cm/sm         : (M, M) f32 bases for the M-axis DFT (VMEM resident).
    yre/yim       : (tb*M, N) f32 VMEM scratch holding the stage-1 results.
    """
    # ---- Stage 1: DFT along N as ONE large (tb*M, N) x (N, N) matmul ----
    x = _bf16_split(x_ref[...].astype(jnp.float32), compensated)
    cn = _bf16_split(cn_ref[...], compensated)
    sn = _bf16_split(sn_ref[...], compensated)
    yre_ref[...] = _split_dot(x, cn)          # y_re     =  x @ C_N
    yim_ref[...] = _split_dot(x, sn)          # y_im_neg =  x @ S_N

    # Hoist the loop-invariant M-axis basis splits out of the loop.
    cm = _bf16_split(cm_ref[...], compensated)
    sm = _bf16_split(sm_ref[...], compensated)
    tb = x_ref.shape[0] // bm                  # static

    # ---- Stage 2: DFT along M, per batch slice, as a LEFT multiply ----
    # (no transposes; the previous version burned XLU slots + VMEM on three
    #  swapaxes of the whole tile).
    def body(b, carry):
        r0 = pl.multiple_of(b * bm, bm)
        yr = _bf16_split(yre_ref[pl.ds(r0, bm), :], compensated)
        yi = _bf16_split(yim_ref[pl.ds(r0, bm), :], compensated)
        z = _split_dot(cm, yr) - _split_dot(sm, yi)   # C_M @ y_re - S_M @ y_im
        o_ref[pl.ds(r0, bm), :] = z.astype(o_ref.dtype)
        return carry

    lax.fori_loop(0, tb, body, 0)


def _fft2_real_kernel(x_ref, cn_ref, sn_ref, cm_ref, sm_ref, o_ref,
                      yre_ref, yim_ref, *, bm, compensated):
    _fft2_real_body(x_ref, cn_ref, sn_ref, cm_ref, sm_ref, o_ref,
                    yre_ref, yim_ref, bm=bm, compensated=compensated)


def _fft2_real_kernel_square(x_ref, c_ref, s_ref, o_ref,
                             yre_ref, yim_ref, *, bm, compensated):
    # M == N: one C/S basis pair serves both stages (halves basis VMEM + DMA).
    _fft2_real_body(x_ref, c_ref, s_ref, c_ref, s_ref, o_ref,
                    yre_ref, yim_ref, bm=bm, compensated=compensated)


# ----------------------------------------------------------------------------
# Plain-XLA fallback (lane-sparse shapes / bases too big for VMEM)
# ----------------------------------------------------------------------------
def _fft2_real_xla(x):
    M, N = int(x.shape[-2]), int(x.shape[-1])
    cn, sn = _dft_basis(N)
    cm, sm = _dft_basis(M)
    p = lax.Precision.HIGHEST
    xf = x.astype(jnp.float32)
    y_re = jnp.einsum('...mn,nk->...mk', xf, cn, precision=p)
    y_im = jnp.einsum('...mn,nk->...mk', xf, sn, precision=p)
    return (jnp.einsum('jm,...mk->...jk', cm, y_re, precision=p)
            - jnp.einsum('jm,...mk->...jk', sm, y_im, precision=p))


# ----------------------------------------------------------------------------
# Wrapper
# ----------------------------------------------------------------------------
_VMEM_USE_BUDGET = 36 * 1024 * 1024    # what we size tiles against
_VMEM_LIMIT_BYTES = 48 * 1024 * 1024   # requested scoped-VMEM limit (< v7x 64 MiB)
_TARGET_TILE_BYTES = 4 * 1024 * 1024   # per-step input-tile target


def _auto_batch_tile(batch, M, N, itemsize, square):
    """Batch slices per grid step, sized against the VMEM budget. 0 => no fit."""
    basis_elems = (2 * N * N) if square else (2 * (M * M + N * N))
    bases_bytes = 3 * basis_elems * 4          # double-buffered f32 + bf16 splits
    # Per batch slice, per step: input tile x2 (double-buffered), its f32 cast
    # + bf16 splits, f32 output tile x2 (double-buffered), y_re+y_im scratch.
    per_slice = M * N * (2 * itemsize + 8 + 2 * 4 + 2 * 4)
    avail = _VMEM_USE_BUDGET - bases_bytes
    if avail < per_slice:
        return 0
    tb = min(avail // per_slice,
             max(1, _TARGET_TILE_BYTES // (M * N * itemsize)),
             batch)
    if batch >= 2:
        tb = min(tb, -(-batch // 2))   # keep grid >= 2 so both v7x TCs get work
    return int(max(1, tb))


def fourier_transformation(x, *, compensated=True, force_pallas=False):
    """Re(fft2(x, norm='backward')) over the last two axes.  Returns float32.

    compensated=True  -> 3-pass bf16 split (~fp32 accuracy, default)
    compensated=False -> 1-pass bf16 (fastest, ~0.5% relative error)
    """
    orig_shape = x.shape
    if len(orig_shape) < 2:
        raise ValueError("fft2 requires at least 2 dimensions")
    M, N = int(orig_shape[-2]), int(orig_shape[-1])
    batch = 1
    for d in orig_shape[:-2]:
        batch *= int(d)

    square = (M == N)
    itemsize = int(jnp.dtype(x.dtype).itemsize)
    tb = _auto_batch_tile(batch, M, N, itemsize, square)
    lane_dense = (N % 128 == 0) and (M % 8 == 0)

    if tb == 0 or not (lane_dense or force_pallas):
        # TODO(synk): lane-sparse shapes (N % 128 != 0 / M % 8 != 0) and DFT
        # bases exceeding the VMEM budget take plain XLA matmuls instead.
        return _fft2_real_xla(x).reshape(orig_shape)

    # Present the batch as a flattened (batch*M, N) row slab (free reshape).
    xf = x.reshape(batch * M, N)
    rows_per_block = tb * M
    grid = (pl.cdiv(batch, tb),)       # ragged last block is masked by Pallas

    cn, sn = _dft_basis(N)
    if square:
        kernel = functools.partial(_fft2_real_kernel_square,
                                   bm=M, compensated=compensated)
        basis_args = (cn, sn)
        basis_specs = [pl.BlockSpec((N, N), lambda i: (0, 0)),
                       pl.BlockSpec((N, N), lambda i: (0, 0))]
    else:
        cm, sm = _dft_basis(M)
        kernel = functools.partial(_fft2_real_kernel,
                                   bm=M, compensated=compensated)
        basis_args = (cn, sn, cm, sm)
        basis_specs = [pl.BlockSpec((N, N), lambda i: (0, 0)),
                       pl.BlockSpec((N, N), lambda i: (0, 0)),
                       pl.BlockSpec((M, M), lambda i: (0, 0)),
                       pl.BlockSpec((M, M), lambda i: (0, 0))]

    out = pl.pallas_call(
        kernel,
        out_shape=jax.ShapeDtypeStruct((batch * M, N), jnp.float32),
        grid_spec=pltpu.PrefetchScalarGridSpec(
            num_scalar_prefetch=0,
            grid=grid,
            in_specs=[pl.BlockSpec((rows_per_block, N), lambda i: (i, 0))]
                     + basis_specs,
            out_specs=pl.BlockSpec((rows_per_block, N), lambda i: (i, 0)),
            scratch_shapes=[pltpu.VMEM((rows_per_block, N), jnp.float32),
                            pltpu.VMEM((rows_per_block, N), jnp.float32)],
        ),
        compiler_params=pltpu.CompilerParams(
            dimension_semantics=("parallel",),
            vmem_limit_bytes=_VMEM_LIMIT_BYTES,
        ),
    )(xf, *basis_args)

    return out.reshape(orig_shape)


# ----------------------------------------------------------------------------
# Demo / self-test
# ----------------------------------------------------------------------------
if __name__ == "__main__":
    key = jax.random.PRNGKey(0)
    k1, k2 = jax.random.split(key)

    # 1) Canonical module-sized input, forced through the Pallas kernel.
    x_small = jax.random.normal(k1, (2, 4, 16, 16), dtype=jnp.float32)
    out_small = jax.block_until_ready(
        fourier_transformation(x_small, force_pallas=True))
    ref_small = np.fft.fft2(np.asarray(x_small, dtype=np.float64)).real
    assert out_small.shape == x_small.shape
    err_small = float(np.max(np.abs(np.asarray(out_small) - ref_small)))
    assert np.allclose(np.asarray(out_small), ref_small,
                       atol=1e-2, rtol=1e-3), err_small

    # 2) Lane-dense shape (N multiple of 128) taking the auto Pallas path.
    x_big = jax.random.normal(k2, (2, 2, 128, 128), dtype=jnp.float32)
    out_big = jax.block_until_ready(fourier_transformation(x_big))
    ref_big = np.fft.fft2(np.asarray(x_big, dtype=np.float64)).real
    err_big = float(np.max(np.abs(np.asarray(out_big) - ref_big)))
    assert np.allclose(np.asarray(out_big), ref_big,
                       atol=5e-2, rtol=1e-3), err_big

    print("KERNEL_OK")
</pallas_src>

<mosaic_0001>
module attributes {stable_mosaic.version = 11 : i64} {
  func.func @_fft2_real_kernel_square(%arg0: i32, %arg1: memref<64x16xf32, #tpu.memory_space<vmem>>, %arg2: memref<16x16xf32, #tpu.memory_space<vmem>>, %arg3: memref<16x16xf32, #tpu.memory_space<vmem>>, %arg4: memref<64x16xf32, #tpu.memory_space<vmem>>, %arg5: memref<64x16xf32, #tpu.memory_space<vmem>>, %arg6: memref<64x16xf32, #tpu.memory_space<vmem>>) attributes {dimension_semantics = [#tpu.dimension_semantics<parallel>], iteration_bounds = array<i64: 2>, scalar_prefetch = 0 : i64, scratch_operands = 2 : i64, tpu.core_type = #tpu.core_type<tc>, window_params = [{transform_indices = @transform_0, window_bounds = array<i64: 64, 16>}, {pipeline_mode = #tpu.pipeline_mode<synchronous>, transform_indices = @transform_1, window_bounds = array<i64: 16, 16>}, {pipeline_mode = #tpu.pipeline_mode<synchronous>, transform_indices = @transform_2, window_bounds = array<i64: 16, 16>}, {transform_indices = @transform_3, window_bounds = array<i64: 64, 16>}]} {
    %c0 = arith.constant 0 : index
    %c0_0 = arith.constant 0 : index
    %0 = vector.load %arg1[%c0, %c0_0] : memref<64x16xf32, #tpu.memory_space<vmem>>, vector<64x16xf32>
    %1 = arith.truncf %0 : vector<64x16xf32> to vector<64x16xbf16>
    %2 = arith.extf %1 : vector<64x16xbf16> to vector<64x16xf32>
    %3 = arith.subf %0, %2 : vector<64x16xf32>
    %4 = arith.truncf %3 : vector<64x16xf32> to vector<64x16xbf16>
    %c0_1 = arith.constant 0 : index
    %c0_2 = arith.constant 0 : index
    %5 = vector.load %arg2[%c0_1, %c0_2] : memref<16x16xf32, #tpu.memory_space<vmem>>, vector<16x16xf32>
    %6 = arith.truncf %5 : vector<16x16xf32> to vector<16x16xbf16>
    %7 = arith.extf %6 : vector<16x16xbf16> to vector<16x16xf32>
    %8 = arith.subf %5, %7 : vector<16x16xf32>
    %9 = arith.truncf %8 : vector<16x16xf32> to vector<16x16xbf16>
    %c0_3 = arith.constant 0 : index
    %c0_4 = arith.constant 0 : index
    %10 = vector.load %arg3[%c0_3, %c0_4] : memref<16x16xf32, #tpu.memory_space<vmem>>, vector<16x16xf32>
    %11 = arith.truncf %10 : vector<16x16xf32> to vector<16x16xbf16>
    %12 = arith.extf %11 : vector<16x16xbf16> to vector<16x16xf32>
    %13 = arith.subf %10, %12 : vector<16x16xf32>
    %14 = arith.truncf %13 : vector<16x16xf32> to vector<16x16xbf16>
    %cst = arith.constant dense<0.000000e+00> : vector<64x16xf32>
    %15 = tpu.matmul %1, %6, %cst {dimension_numbers = #tpu.dot_dimension_numbers<[1], [0], [0], [1], [0, 0, 1, 1], [], []>} : vector<64x16xbf16>, vector<16x16xbf16>, vector<64x16xf32> -> vector<64x16xf32>
    %cst_5 = arith.constant dense<0.000000e+00> : vector<64x16xf32>
    %16 = tpu.matmul %1, %9, %cst_5 {dimension_numbers = #tpu.dot_dimension_numbers<[1], [0], [0], [1], [0, 0, 1, 1], [], []>} : vector<64x16xbf16>, vector<16x16xbf16>, vector<64x16xf32> -> vector<64x16xf32>
    %cst_6 = arith.constant dense<0.000000e+00> : vector<64x16xf32>
    %17 = tpu.matmul %4, %6, %cst_6 {dimension_numbers = #tpu.dot_dimension_numbers<[1], [0], [0], [1], [0, 0, 1, 1], [], []>} : vector<64x16xbf16>, vector<16x16xbf16>, vector<64x16xf32> -> vector<64x16xf32>
    %18 = arith.addf %16, %17 : vector<64x16xf32>
    %19 = arith.addf %15, %18 : vector<64x16xf32>
    %c0_7 = arith.constant 0 : index
    %c0_8 = arith.constant 0 : index
    %20 = vector.load %arg5[%c0_7, %c0_8] : memref<64x16xf32, #tpu.memory_space<vmem>>, vector<64x16xf32>
    tpu.vector_store %arg5[%c0_7, %c0_8], %19 {strides = array<i32>} : memref<64x16xf32, #tpu.memory_space<vmem>>, vector<64x16xf32>,
    %cst_9 = arith.constant dense<0.000000e+00> : vector<64x16xf32>
    %21 = tpu.matmul %1, %11, %cst_9 {dimension_numbers = #tpu.dot_dimension_numbers<[1], [0], [0], [1], [0, 0, 1, 1], [], []>} : vector<64x16xbf16>, vector<16x16xbf16>, vector<64x16xf32> -> vector<64x16xf32>
    %cst_10 = arith.constant dense<0.000000e+00> : vector<64x16xf32>
    %22 = tpu.matmul %1, %14, %cst_10 {dimension_numbers = #tpu.dot_dimension_numbers<[1], [0], [0], [1], [0, 0, 1, 1], [], []>} : vector<64x16xbf16>, vector<16x16xbf16>, vector<64x16xf32> -> vector<64x16xf32>
    %cst_11 = arith.constant dense<0.000000e+00> : vector<64x16xf32>
    %23 = tpu.matmul %4, %11, %cst_11 {dimension_numbers = #tpu.dot_dimension_numbers<[1], [0], [0], [1], [0, 0, 1, 1], [], []>} : vector<64x16xbf16>, vector<16x16xbf16>, vector<64x16xf32> -> vector<64x16xf32>
    %24 = arith.addf %22, %23 : vector<64x16xf32>
    %25 = arith.addf %21, %24 : vector<64x16xf32>
    %c0_12 = arith.constant 0 : index
    %c0_13 = arith.constant 0 : index
    %26 = vector.load %arg6[%c0_12, %c0_13] : memref<64x16xf32, #tpu.memory_space<vmem>>, vector<64x16xf32>
    tpu.vector_store %arg6[%c0_12, %c0_13], %25 {strides = array<i32>} : memref<64x16xf32, #tpu.memory_space<vmem>>, vector<64x16xf32>,
    %c0_14 = arith.constant 0 : index
    %c0_15 = arith.constant 0 : index
    %27 = vector.load %arg2[%c0_14, %c0_15] : memref<16x16xf32, #tpu.memory_space<vmem>>, vector<16x16xf32>
    %28 = arith.truncf %27 : vector<16x16xf32> to vector<16x16xbf16>
    %29 = arith.extf %28 : vector<16x16xbf16> to vector<16x16xf32>
    %30 = arith.subf %27, %29 : vector<16x16xf32>
    %31 = arith.truncf %30 : vector<16x16xf32> to vector<16x16xbf16>
    %c0_16 = arith.constant 0 : index
    %c0_17 = arith.constant 0 : index
    %32 = vector.load %arg3[%c0_16, %c0_17] : memref<16x16xf32, #tpu.memory_space<vmem>>, vector<16x16xf32>
    %33 = arith.truncf %32 : vector<16x16xf32> to vector<16x16xbf16>
    %34 = arith.extf %33 : vector<16x16xbf16> to vector<16x16xf32>
    %35 = arith.subf %32, %34 : vector<16x16xf32>
    %36 = arith.truncf %35 : vector<16x16xf32> to vector<16x16xbf16>
    %c0_i32 = arith.constant 0 : i32
    %c4_i32 = arith.constant 4 : i32
    %37 = arith.addi %c0_i32, %c4_i32 : i32
    %c1_i32 = arith.constant 1 : i32
    scf.for %arg7 = %c0_i32 to %37 step %c1_i32  : i32 {
      %c16_i32 = arith.constant 16 : i32
      %38 = arith.muli %arg7, %c16_i32 : i32
      %39 = tpu.assume_multiple %38, 16 : i32
      %40 = arith.index_cast %39 : i32 to index
      %c0_19 = arith.constant 0 : index
      %41 = vector.load %arg5[%40, %c0_19] : memref<64x16xf32, #tpu.memory_space<vmem>>, vector<16x16xf32>
      %42 = arith.truncf %41 : vector<16x16xf32> to vector<16x16xbf16>
      %43 = arith.extf %42 : vector<16x16xbf16> to vector<16x16xf32>
      %44 = arith.subf %41, %43 : vector<16x16xf32>
      %45 = arith.truncf %44 : vector<16x16xf32> to vector<16x16xbf16>
      %46 = arith.index_cast %39 : i32 to index
      %c0_20 = arith.constant 0 : index
      %47 = vector.load %arg6[%46, %c0_20] : memref<64x16xf32, #tpu.memory_space<vmem>>, vector<16x16xf32>
      %48 = arith.truncf %47 : vector<16x16xf32> to vector<16x16xbf16>
      %49 = arith.extf %48 : vector<16x16xbf16> to vector<16x16xf32>
      %50 = arith.subf %47, %49 : vector<16x16xf32>
      %51 = arith.truncf %50 : vector<16x16xf32> to vector<16x16xbf16>
      %cst_21 = arith.constant dense<0.000000e+00> : vector<16x16xf32>
      %52 = tpu.matmul %28, %42, %cst_21 {dimension_numbers = #tpu.dot_dimension_numbers<[1], [0], [0], [1], [0, 0, 1, 1], [], []>} : vector<16x16xbf16>, vector<16x16xbf16>, vector<16x16xf32> -> vector<16x16xf32>
      %cst_22 = arith.constant dense<0.000000e+00> : vector<16x16xf32>
      %53 = tpu.matmul %28, %45, %cst_22 {dimension_numbers = #tpu.dot_dimension_numbers<[1], [0], [0], [1], [0, 0, 1, 1], [], []>} : vector<16x16xbf16>, vector<16x16xbf16>, vector<16x16xf32> -> vector<16x16xf32>
      %cst_23 = arith.constant dense<0.000000e+00> : vector<16x16xf32>
      %54 = tpu.matmul %31, %42, %cst_23 {dimension_numbers = #tpu.dot_dimension_numbers<[1], [0], [0], [1], [0, 0, 1, 1], [], []>} : vector<16x16xbf16>, vector<16x16xbf16>, vector<16x16xf32> -> vector<16x16xf32>
      %55 = arith.addf %53, %54 : vector<16x16xf32>
      %56 = arith.addf %52, %55 : vector<16x16xf32>
      %cst_24 = arith.constant dense<0.000000e+00> : vector<16x16xf32>
      %57 = tpu.matmul %33, %48, %cst_24 {dimension_numbers = #tpu.dot_dimension_numbers<[1], [0], [0], [1], [0, 0, 1, 1], [], []>} : vector<16x16xbf16>, vector<16x16xbf16>, vector<16x16xf32> -> vector<16x16xf32>
      %cst_25 = arith.constant dense<0.000000e+00> : vector<16x16xf32>
      %58 = tpu.matmul %33, %51, %cst_25 {dimension_numbers = #tpu.dot_dimension_numbers<[1], [0], [0], [1], [0, 0, 1, 1], [], []>} : vector<16x16xbf16>, vector<16x16xbf16>, vector<16x16xf32> -> vector<16x16xf32>
      %cst_26 = arith.constant dense<0.000000e+00> : vector<16x16xf32>
      %59 = tpu.matmul %36, %48, %cst_26 {dimension_numbers = #tpu.dot_dimension_numbers<[1], [0], [0], [1], [0, 0, 1, 1], [], []>} : vector<16x16xbf16>, vector<16x16xbf16>, vector<16x16xf32> -> vector<16x16xf32>
      %60 = arith.addf %58, %59 : vector<16x16xf32>
      %61 = arith.addf %57, %60 : vector<16x16xf32>
      %62 = arith.subf %56, %61 : vector<16x16xf32>
      %63 = arith.index_cast %39 : i32 to index
      %c0_27 = arith.constant 0 : index
      %64 = vector.load %arg4[%63, %c0_27] : memref<64x16xf32, #tpu.memory_space<vmem>>, vector<16x16xf32>
      tpu.vector_store %arg4[%63, %c0_27], %62 {strides = array<i32>} : memref<64x16xf32, #tpu.memory_space<vmem>>, vector<16x16xf32>,
    }
    %c4_i32_18 = arith.constant 4 : i32
    return
  }
  func.func @transform_0(%arg0: i32) -> (i32, i32) {
    %c0_i32 = arith.constant 0 : i32
    %c0_i32_0 = arith.constant 0 : i32
    return %arg0, %c0_i32 : i32, i32
  }
  func.func @transform_1(%arg0: i32) -> (i32, i32) {
    %c0_i32 = arith.constant 0 : i32
    %c0_i32_0 = arith.constant 0 : i32
    %c0_i32_1 = arith.constant 0 : i32
    return %c0_i32, %c0_i32_0 : i32, i32
  }
  func.func @transform_2(%arg0: i32) -> (i32, i32) {
    %c0_i32 = arith.constant 0 : i32
    %c0_i32_0 = arith.constant 0 : i32
    %c0_i32_1 = arith.constant 0 : i32
    return %c0_i32, %c0_i32_0 : i32, i32
  }
  func.func @transform_3(%arg0: i32) -> (i32, i32) {
    %c0_i32 = arith.constant 0 : i32
    %c0_i32_0 = arith.constant 0 : i32
    return %arg0, %c0_i32 : i32, i32
  }
}

</mosaic_0001>

<bundles_post_ra>
// kernel: tpu_custom_call.1
= control target key start
LH: loop header
LB: loop body
LE: loop exit
PB: predicated region body
PF: predicated region fallthrough
CT: control target
= control target key end

     0   :  { %s1309_s12 = smov 0   ;;  %s1439_s0 = inlined_call_operand.vmem [shape: f32[128,16], index: 0, kind: input, shape index: {}]   ;;  %s1440_s1 = inlined_call_operand.vmem [shape: f32[16,16], index: 1, kind: input, shape index: {}]   ;;  %s1441_s2 = inlined_call_operand.vmem [shape: f32[16,16], index: 2, kind: input, shape index: {}]   ;;  %s1442_s3 = inlined_call_operand.vmem [shape: f32[128,16], index: 3, kind: output, shape index: {}]  }
   0x1 LB: > { %s1025_s13 = sadd.s32 4294967295, %s1281_s12   ;;  %p1029_p0 = scmp.ge.s32.totalorder %s1281_s12, 1  ;;  %s1281_s12 = sphi %s1309_s12, %s13_s12  }
   0x2   : > { %p138_p1 = scmp.lt.s32.totalorder %s1281_s12, 3 }
   0x4   : > { %p139_p2 = pnand %p1029_p0, %p138_p1 }
   0x5   : > { %v207_v0 = vld [vmem:[%s1440_s1] sm:$0xff] (!%p139_p2)  ;;  %v208_v1 = vld [vmem:[%s1440_s1 + $0x8] sm:$0xff] (!%p139_p2)  ;;  %s1030_s20 = sshll.u32 (!%p139_p2), %s1025_s13, 3  ;;  %vm223_vm0 = vcmask (!%p139_p2), 130048   ;;  %s1401_s30 = smov (!%p139_p2), 0  }
   0x6   : > { %142 = sbr.rel (%p139_p2) target bundleno = 536 (0x218), region = 32  ;;  %v215_v2 = vld [vmem:[%s1441_s2] sm:$0xff] (!%p139_p2)  ;;  %v1326_v3 = vpack.c.bf16 (!%p139_p2), %v208_v1, %v207_v0  ;;  %v216_v4 = vld [vmem:[%s1441_s2 + $0x8] sm:$0xff] (!%p139_p2)  ;;  %p163_p3 = scmp.lt.s32.totalorder (!%p139_p2), %s1030_s20, 15 }
   0x7   : > { %v1331_v5 = vpack.c.bf16 (!%p139_p2), %v216_v4, %v215_v2 }
   0x8   : > { %1109 = vmatprep.subr.bf16.mxu0 (!%p139_p2), %v1326_v3  ;;  %v210_v6 = vunpack.c.l.bf16 (!%p139_p2), %v1326_v3  ;;  %v211_v7 = vunpack.c.h.bf16 (!%p139_p2), %v1326_v3 }
   0x9   : > { %1139 = vmatprep.subr.bf16.mxu1 (!%p139_p2), %v1331_v5  ;;  %1110 = vmatpush3.bf16.msra.mxu0 (!%p139_p2), %v1326_v3  ;;  %v218_v8 = vunpack.c.l.bf16 (!%p139_p2), %v1331_v5  ;;  %v219_v9 = vunpack.c.h.bf16 (!%p139_p2), %v1331_v5 }
   0xa   : > { %1140 = vmatpush3.bf16.msra.mxu1 (!%p139_p2), %v1331_v5  ;;  %v212_v10 = vsub.f32 (!%p139_p2), %v207_v0, %v210_v6  ;;  %v213_v11 = vsub.f32 (!%p139_p2), %v208_v1, %v211_v7 }
   0xb   : > { %v220_v12 = vsub.f32 (!%p139_p2), %v215_v2, %v218_v8  ;;  %v221_v13 = vsub.f32 (!%p139_p2), %v216_v4, %v219_v9 }
   0xc   : > { %v1349_v16 = vpack.c.bf16 (!%p139_p2), %v213_v11, %v212_v10 }
   0xd   : > { %s1444_s20 = smov (!%p163_p3, %s1030_s20), 15  ;;  %v1351_v19 = vpack.c.bf16 %v221_v13, %v220_v12 }
   0xe   : > { %s1031_s23 = sshll.u32 %s1444_s20, 3  ;;  %1119 = vmatprep.subr.bf16.mxu0 %v1349_v16 }
   0xf   : > { %s166_s26 = scalar_lea.vmem %s1439_s0, %s1031_s23  ;;  %s1347_s29 = scalar_lea.vmem %s1442_s3, %s1031_s23  ;;  %1149 = vmatprep.subr.bf16.mxu1 %v1351_v19 }
  0x10   : > { %v175_v14 = vld [vmem:[%s166_s26] sm:$0xff]  ;;  %v176_v15 = vld [vmem:[%s166_s26 + $0x8] sm:$0xff]  ;;  %v177_v17 = vld [vmem:[%s166_s26 + $0x10] sm:$0xff] }
  0x11   : > { %v183_v18 = vpack.c.bf16 %v176_v15, %v175_v14  ;;  %v178_v20 = vld [vmem:[%s166_s26 + $0x18] sm:$0xff]  ;;  %v179_v21 = vld [vmem:[%s166_s26 + $0x20] sm:$0xff]  ;;  %v180_v22 = vld [vmem:[%s166_s26 + $0x28] sm:$0xff] }
  0x12   : > { %v184_v23 = vpack.c.bf16 %v178_v20, %v177_v17  ;;  %v185_v24 = vpack.c.bf16 %v180_v22, %v179_v21  ;;  %v181_v25 = vld [vmem:[%s166_s26 + $0x30] sm:$0xff]  ;;  %v182_v26 = vld [vmem:[%s166_s26 + $0x38] sm:$0xff] }
  0x13   : > { %v187_v27 = vunpack.c.l.bf16 %v183_v18  ;;  %v188_v28 = vunpack.c.h.bf16 %v183_v18  ;;  %v186_v29 = vpack.c.bf16 %v182_v26, %v181_v25 }
  0x14   : > { %v189_v30 = vunpack.c.l.bf16 %v184_v23  ;;  %v190_v31 = vunpack.c.h.bf16 %v184_v23  ;;  %v191_v32 = vunpack.c.l.bf16 %v185_v24  ;;  %v192_v33 = vunpack.c.h.bf16 %v185_v24 }
  0x15   : > { %v195_v34 = vsub.f32 %v175_v14, %v187_v27  ;;  %v196_v35 = vsub.f32 %v176_v15, %v188_v28  ;;  %v193_v36 = vunpack.c.l.bf16 %v186_v29  ;;  %v194_v37 = vunpack.c.h.bf16 %v186_v29 }
  0x16   : > { %v197_v38 = vsub.f32 %v177_v17, %v189_v30  ;;  %v198_v39 = vsub.f32 %v178_v20, %v190_v31  ;;  %v199_v40 = vsub.f32 %v179_v21, %v191_v32  ;;  %v200_v41 = vsub.f32 %v180_v22, %v192_v33 }
  0x17   : > { %v203_v42 = vpack.c.bf16 %v196_v35, %v195_v34  ;;  %v201_v45 = vsub.f32 %v181_v25, %v193_v36  ;;  %v202_v46 = vsub.f32 %v182_v26, %v194_v37 }
  0x18   : > { %v204_v43 = vpack.c.bf16 %v198_v39, %v197_v38  ;;  %v205_v44 = vpack.c.bf16 %v200_v41, %v199_v40 }
  0x19   : > { %1111 = vmatprep.mubr.msk.bf16.mxu0 %vm223_vm0, %v203_v42  ;;  %1141 = vmatprep.mubr.msk.bf16.mxu1 %vm223_vm0, %v203_v42  ;;  %v206_v47 = vpack.c.bf16 %v202_v46, %v201_v45 }
  0x1a   : > { %1112 = vmatmul.mubr.msk.bf16.vlgmr.msra.gmra.mrb[0].mxu0 %vm223_vm0, %v204_v43  ;;  %1142 = vmatmul.mubr.msk.bf16.vlgmr.msra.gmra.mrb[0].mxu1 %vm223_vm0, %v204_v43 }
  0x1b   : > { %1120 = vmatpush3.bf16.msra.mxu0 %v1349_v16  ;;  %1150 = vmatpush3.bf16.msra.mxu1 %v1351_v19 }
  0x1c   : > { %1115 = vmatprep.mubr.msk.bf16.mxu0 %vm223_vm0, %v205_v44  ;;  %1145 = vmatprep.mubr.msk.bf16.mxu1 %vm223_vm0, %v205_v44 }
  0x1d   : > { %1129 = vmatprep.subr.bf16.mxu0 %v1326_v3  ;;  %1159 = vmatprep.subr.bf16.mxu1 %v1331_v5 }
  0x22   : > { %1116 = vmatmul.mubr.msk.bf16.gmra.mrb[4].mxu0 %vm223_vm0, %v206_v47  ;;  %1146 = vmatmul.mubr.msk.bf16.gmra.mrb[4].mxu1 %vm223_vm0, %v206_v47 }
  0x23   : > { %1121 = vmatprep.mubr.msk.bf16.mxu0 %vm223_vm0, %v183_v18  ;;  %1151 = vmatprep.mubr.msk.bf16.mxu1 %vm223_vm0, %v183_v18 }
  0x2a   : > { %1122 = vmatmul.mubr.msk.bf16.vlgmr.msra.gmra.mrb[0].mxu0 %vm223_vm0, %v184_v23  ;;  %1152 = vmatmul.mubr.msk.bf16.vlgmr.msra.gmra.mrb[0].mxu1 %vm223_vm0, %v184_v23 }
  0x2b   : > { %1130 = vmatpush3.bf16.msra.mxu0 %v1326_v3  ;;  %1160 = vmatpush3.bf16.msra.mxu1 %v1331_v5 }
  0x2c   : > { %1125 = vmatprep.mubr.msk.bf16.mxu0 %vm223_vm0, %v185_v24  ;;  %1155 = vmatprep.mubr.msk.bf16.mxu1 %vm223_vm0, %v185_v24 }
  0x32   : > { %1126 = vmatmul.mubr.msk.bf16.gmra.mrb[4].mxu0 %vm223_vm0, %v186_v29  ;;  %1156 = vmatmul.mubr.msk.bf16.gmra.mrb[4].mxu1 %vm223_vm0, %v186_v29 }
  0x33   : > { %1131 = vmatprep.mubr.msk.bf16.mxu0 %vm223_vm0, %v183_v18  ;;  %1161 = vmatprep.mubr.msk.bf16.mxu1 %vm223_vm0, %v183_v18 }
  0x3a   : > { %1132 = vmatmul.mubr.msk.bf16.vlgmr.msra.gmra.mrb[0].mxu0 %vm223_vm0, %v184_v23  ;;  %1162 = vmatmul.mubr.msk.bf16.vlgmr.msra.gmra.mrb[0].mxu1 %vm223_vm0, %v184_v23 }
  0x3b   : > { %1135 = vmatprep.mubr.msk.bf16.mxu0 %vm223_vm0, %v185_v24  ;;  %1165 = vmatprep.mubr.msk.bf16.mxu1 %vm223_vm0, %v185_v24 }
  0x42   : > { %1136 = vmatmul.mubr.msk.bf16.gmra.mrb[4].mxu0 %vm223_vm0, %v186_v29  ;;  %1166 = vmatmul.mubr.msk.bf16.gmra.mrb[4].mxu1 %vm223_vm0, %v186_v29 }
 0x10d   : > { %v1133_v48 = vpop.f32.mrb[0].mxu0  ;;  %v1163_v49 = vpop.f32.mrb[0].mxu1 }
 0x10e   : > { %445 = vst.msk [vmem:[#allocation2 + $0x10] sm:$0xff] %vm223_vm0, %v1133_v48  ;;  %648 = vst.msk [vmem:[#allocation3 + $0x10] sm:$0xff] %vm223_vm0, %v1163_v49  ;;  %v412_v50 = vpop.f32.mrb[1].mxu0  ;;  %v615_v51 = vpop.f32.mrb[1].mxu1 }
 0x10f   : > { %443 = vst.msk [vmem:[#allocation2] sm:$0xff] %vm223_vm0, %v412_v50  ;;  %646 = vst.msk [vmem:[#allocation3] sm:$0xff] %vm223_vm0, %v615_v51  ;;  %v1134_v52 = vpop.f32.mrb[2].mxu0  ;;  %v1164_v53 = vpop.f32.mrb[2].mxu1 }
 0x110   : > { %446 = vst.msk [vmem:[#allocation2 + $0x18] sm:$0xff] %vm223_vm0, %v1134_v52  ;;  %649 = vst.msk [vmem:[#allocation3 + $0x18] sm:$0xff] %vm223_vm0, %v1164_v53  ;;  %v415_v54 = vpop.f32.mrb[3].mxu0  ;;  %v618_v55 = vpop.f32.mrb[3].mxu1 }
 0x111   : > { %444 = vst.msk [vmem:[#allocation2 + $0x8] sm:$0xff] %vm223_vm0, %v415_v54  ;;  %647 = vst.msk [vmem:[#allocation3 + $0x8] sm:$0xff] %vm223_vm0, %v618_v55 }
 0x115   : > { %v1137_v56 = vpop.f32.mrb[4].mxu0  ;;  %v1167_v57 = vpop.f32.mrb[4].mxu1 }
 0x116   : > { %449 = vst.msk [vmem:[#allocation2 + $0x30] sm:$0xff] %vm223_vm0, %v1137_v56  ;;  %652 = vst.msk [vmem:[#allocation3 + $0x30] sm:$0xff] %vm223_vm0, %v1167_v57  ;;  %v428_v58 = vpop.f32.mrb[5].mxu0  ;;  %v631_v59 = vpop.f32.mrb[5].mxu1 }
 0x117   : > { %447 = vst.msk [vmem:[#allocation2 + $0x20] sm:$0xff] %vm223_vm0, %v428_v58  ;;  %650 = vst.msk [vmem:[#allocation3 + $0x20] sm:$0xff] %vm223_vm0, %v631_v59  ;;  %v1138_v60 = vpop.f32.mrb[6].mxu0  ;;  %v1168_v61 = vpop.f32.mrb[6].mxu1 }
 0x118   : > { %450 = vst.msk [vmem:[#allocation2 + $0x38] sm:$0xff] %vm223_vm0, %v1138_v60  ;;  %653 = vst.msk [vmem:[#allocation3 + $0x38] sm:$0xff] %vm223_vm0, %v1168_v61  ;;  %v431_v62 = vpop.f32.mrb[7].mxu0  ;;  %v634_v63 = vpop.f32.mrb[7].mxu1 }
 0x119   : > { %448 = vst.msk [vmem:[#allocation2 + $0x28] sm:$0xff] %vm223_vm0, %v431_v62  ;;  %651 = vst.msk [vmem:[#allocation3 + $0x28] sm:$0xff] %vm223_vm0, %v634_v63 }
 0x11a LB: >> { %v1287_v0 = vmov 0.0   ;;  %s1407_s4 = sshll.u32 %s1285_s30, 4  ;;  %vm1288_vm1 = vmmov 0   ;;  %s675_s30 = sadd.s32 1, %s1285_s30   ;;  %s1285_s30 = sphi %s1401_s30, %s675_s30  }
 0x11b   : >> { %1169 = vmatprep.subr.bf16.mxu0 %v1287_v0  ;;  %1187 = vmatprep.subr.bf16.mxu1 %v1287_v0  ;;  %s677_s5 = scalar_lea.vmem [#allocation2], %s1407_s4  ;;  %s686_s6 = scalar_lea.vmem [#allocation3], %s1407_s4 }
 0x11c   : >> { %1171 = vmatprep.mubr.msk.bf16.mxu0 %vm1288_vm1, %v1287_v0  ;;  %1189 = vmatprep.mubr.msk.bf16.mxu1 %vm1288_vm1, %v1287_v0  ;;  %s955_s7 = scalar_lea.vmem %s1347_s29, %s1407_s4  ;;  %p672_p4 = scmp.ge.s32.totalorder %s675_s30, 4  }
 0x120   : >> { %v678_v1 = vld [vmem:[%s677_s5] sm:$0xff]  ;;  %v679_v2 = vld [vmem:[%s677_s5 + $0x8] sm:$0xff] }
 0x121   : >> { %v687_v4 = vld [vmem:[%s686_s6] sm:$0xff]  ;;  %v680_v6 = vpack.c.bf16 %v679_v2, %v678_v1  ;;  %v688_v7 = vld [vmem:[%s686_s6 + $0x8] sm:$0xff] }
 0x122   : >> { %v689_v8 = vpack.c.bf16 %v688_v7, %v687_v4 }
 0x123   : >> { %1170 = vmatpush3.bf16.msra.mxu0 %v680_v6  ;;  %v681_v9 = vunpack.c.l.bf16 %v680_v6  ;;  %v682_v10 = vunpack.c.h.bf16 %v680_v6 }
 0x124   : >> { %1188 = vmatpush3.bf16.msra.mxu1 %v689_v8  ;;  %1175 = vmatprep.subr.bf16.mxu0 %v1287_v0  ;;  %v690_v11 = vunpack.c.l.bf16 %v689_v8  ;;  %v691_v12 = vunpack.c.h.bf16 %v689_v8 }
 0x125   : >> { %1193 = vmatprep.subr.bf16.mxu1 %v1287_v0  ;;  %v683_v13 = vsub.f32 %v678_v1, %v681_v9  ;;  %v684_v14 = vsub.f32 %v679_v2, %v682_v10 }
 0x126   : >> { %1172 = vmatmul.mubr.msk.bf16.vlgmr.msra.gmra.mrb[0].mxu0 %vm223_vm0, %v1349_v16  ;;  %v692_v15 = vsub.f32 %v687_v4, %v690_v11  ;;  %v693_v17 = vsub.f32 %v688_v7, %v691_v12 }
 0x127   : >> { %1190 = vmatmul.mubr.msk.bf16.vlgmr.msra.gmra.mrb[0].mxu1 %vm223_vm0, %v1351_v19  ;;  %v685_v18 = vpack.c.bf16 %v684_v14, %v683_v13  ;;  %1177 = vmatprep.mubr.msk.bf16.mxu0 %vm1288_vm1, %v1287_v0 }
 0x128   : >> { %v694_v20 = vpack.c.bf16 %v693_v17, %v692_v15  ;;  %1195 = vmatprep.mubr.msk.bf16.mxu1 %vm1288_vm1, %v1287_v0 }
 0x129   : >> { %1176 = vmatpush3.bf16.msra.mxu0 %v685_v18 }
 0x12a   : >> { %1194 = vmatpush3.bf16.msra.mxu1 %v694_v20  ;;  %1181 = vmatprep.subr.bf16.mxu0 %v1287_v0 }
 0x12b   : >> { %1199 = vmatprep.subr.bf16.mxu1 %v1287_v0 }
 0x132   : >> { %1178 = vmatmul.mubr.msk.bf16.vlgmr.msra.gmra.mrb[0].mxu0 %vm223_vm0, %v1326_v3 }
 0x133   : >> { %1196 = vmatmul.mubr.msk.bf16.vlgmr.msra.gmra.mrb[0].mxu1 %vm223_vm0, %v1331_v5  ;;  %1182 = vmatpush3.bf16.msra.mxu0 %v680_v6 }
 0x134   : >> { %1200 = vmatpush3.bf16.msra.mxu1 %v689_v8  ;;  %1183 = vmatprep.mubr.msk.bf16.mxu0 %vm1288_vm1, %v1287_v0 }
 0x135   : >> { %1201 = vmatprep.mubr.msk.bf16.mxu1 %vm1288_vm1, %v1287_v0 }
 0x13e   : >> { %1184 = vmatmul.mubr.msk.bf16.vlgmr.msra.gmra.mrb[0].mxu0 %vm223_vm0, %v1326_v3 }
 0x13f   : >> { %1202 = vmatmul.mubr.msk.bf16.vlgmr.msra.gmra.mrb[0].mxu1 %vm223_vm0, %v1331_v5 }
 0x211   : >> { %v817_v21 = vpop.f32.mrb[0].mxu0  ;;  %674 = sbr.rel (!%p672_p4) target bundleno = 282 (0x11a), region = 72 }
 0x212   : >> { %v946_v22 = vpop.f32.mrb[0].mxu1  ;;  %v1185_v23 = vpop.f32.mrb[1].mxu0 }
 0x213   : >> { %v953_v24 = vsub.f32 %v817_v21, %v946_v22  ;;  %v1203_v25 = vpop.f32.mrb[1].mxu1  ;;  %v820_v26 = vpop.f32.mrb[2].mxu0 }
 0x214   : >> { %v949_v27 = vpop.f32.mrb[2].mxu1  ;;  %v1186_v28 = vpop.f32.mrb[3].mxu0 }
 0x215   : >> { %956 = vst.msk [vmem:[%s955_s7] sm:$0xff] %vm223_vm0, %v953_v24  ;;  %v954_v29 = vsub.f32 %v820_v26, %v949_v27  ;;  %v1204_v30 = vpop.f32.mrb[3].mxu1 }
 0x217   : >> { %957 = vst.msk [vmem:[%s955_s7 + $0x8] sm:$0xff] %vm223_vm0, %v954_v29 }
 0x218 PF: > { %s13_s12 = sadd.s32 1, %s1281_s12  }
 0x219   : > { %p10_p5 = scmp.ge.s32.totalorder %s13_s12, 4  }
 0x21b   :  { %12 = sbr.rel (!%p10_p5) target bundleno = 1 (0x1), region = 83 }

</bundles_post_ra>
